<compile_context>
chip_gen: v7x
topology: tpu7x:2x2x1
jax: 0.10.0
libtpu: 0.0.40
codegen_flags: <defaults>
</compile_context>

<pallas_src>
import jax
import jax.numpy as jnp
from jax.experimental import pallas as pl
from jax.experimental.pallas import tpu as pltpu

N_FEATURES = 11  # == end_dim() in the PyTorch module

_FEATURE_KEYS = (
    "history_lng",
    "history_lat",
    "history_semantic_0",
    "history_semantic_1",
    "history_semantic_2",
    "history_semantic_3",
    "history_semantic_4",
    "history_weekday_sin",
    "history_weekday_cos",
    "history_start_time_sin",
    "history_start_time_cos",
)

# Below this total element count, jnp.stack beats any kernel launch.
_SMALL_FALLBACK_ELEMS = 1 << 16


def _dma_stack_kernel(*refs):
    """Stack 11 HBM (B, T) features into one HBM (11, B, T) array.

    Pure HBM->HBM DMAs: no VMEM staging, no vector loads/stores, no grid.
    Each feature k is copied into the contiguous plane out_ref[k] with its own
    DMA semaphore; all copies are started before any wait so the DMA engines
    overlap freely.
    """
    in_refs = refs[:N_FEATURES]
    out_ref = refs[N_FEATURES]
    sem = refs[N_FEATURES + 1]

    copies = [
        pltpu.make_async_copy(in_refs[k], out_ref.at[k], sem.at[k])
        for k in range(N_FEATURES)
    ]
    for c in copies:
        c.start()
    for c in copies:
        c.wait()


def _pallas_feature_stack(feats, B, T, dtype):
    """Run the HBM->HBM DMA stack kernel; returns (11, B, T)."""
    return pl.pallas_call(
        _dma_stack_kernel,
        out_shape=jax.ShapeDtypeStruct((N_FEATURES, B, T), dtype),
        in_specs=[pl.BlockSpec(memory_space=pl.ANY)] * N_FEATURES,
        out_specs=pl.BlockSpec(memory_space=pl.ANY),
        scratch_shapes=[pltpu.SemaphoreType.DMA((N_FEATURES,))],
    )(*feats)


def input_history_forward(history, *, use_pallas=None):
    """Pallas equivalent of Input_HistoryModule.forward(history)."""
    feats = [history[k] for k in _FEATURE_KEYS]
    B, T = feats[0].shape

    # torch.cat promotes mixed dtypes; DMA copies need src/dst dtypes to match.
    dtype = jnp.result_type(*feats)
    feats = [jnp.asarray(f, dtype=dtype) for f in feats]

    if use_pallas is None:
        use_pallas = B * T * N_FEATURES >= _SMALL_FALLBACK_ELEMS

    if not use_pallas:
        # Tiny shapes (the module's real B=2, T=8 case): no kernel launch.
        input_tensor = jnp.stack(feats, axis=-1)
        return input_tensor, history

    stacked = _pallas_feature_stack(feats, B, T, dtype)  # (11, B, T)

    # Cheap layout change outside the kernel: (11, B, T) -> (B, T, 11).
    # XLA can fuse this transpose into whatever consumes input_tensor; doing
    # it in-kernel would cost ~128x store-slot work or per-element DMAs.
    input_tensor = jnp.transpose(stacked, (1, 2, 0))
    return input_tensor, history


class InputHistoryModule:
    """Mirror of the PyTorch module (fc is unused in forward, kept for parity)."""

    def __init__(self, key=jax.random.PRNGKey(0)):
        # nn.Linear(8, 3, bias=False) -> weight (3, 8); unused in forward.
        self.fc_weight = jax.random.normal(key, (3, 8), dtype=jnp.float32) * 0.1

    @staticmethod
    def end_dim():
        return 11

    def __call__(self, history, **kw):
        return input_history_forward(history, **kw)


def _make_history(key, B, T):
    keys = jax.random.split(key, len(_FEATURE_KEYS))
    return {
        k: jax.random.normal(keys[i], (B, T), dtype=jnp.float32)
        for i, k in enumerate(_FEATURE_KEYS)
    }


if __name__ == "__main__":
    root = jax.random.PRNGKey(0)
    k_small, k_big, k_mod = jax.random.split(root, 3)

    module = InputHistoryModule(key=k_mod)

    # --- toy shapes matching the module's typical use: batch=2, seq=8 ---
    # (falls through the small-size jnp.stack path, matching forward semantics)
    B, T = 2, 8
    history = _make_history(k_small, B, T)
    input_tensor, hist_out = module(history)
    input_tensor = jax.block_until_ready(input_tensor)

    ref = jnp.stack([history[k] for k in _FEATURE_KEYS], axis=-1)
    assert input_tensor.shape == (B, T, N_FEATURES)
    assert jnp.allclose(input_tensor, ref), "mismatch vs reference (small)"
    assert hist_out is history  # dict is passed through untouched

    # --- a larger shape that exercises the Pallas HBM->HBM DMA stack kernel ---
    B2, T2 = 64, 128
    history2 = _make_history(k_big, B2, T2)
    out2, _ = module(history2, use_pallas=True)
    out2 = jax.block_until_ready(out2)
    ref2 = jnp.stack([history2[k] for k in _FEATURE_KEYS], axis=-1)
    assert out2.shape == (B2, T2, N_FEATURES)
    assert jnp.allclose(out2, ref2), "mismatch vs reference (pallas path)"

    print("KERNEL_OK")
</pallas_src>

<mosaic_0001>
module attributes {stable_mosaic.version = 11 : i64} {
  func.func @_dma_stack_kernel(%arg0: memref<64x128xf32, #tpu.memory_space<any>>, %arg1: memref<64x128xf32, #tpu.memory_space<any>>, %arg2: memref<64x128xf32, #tpu.memory_space<any>>, %arg3: memref<64x128xf32, #tpu.memory_space<any>>, %arg4: memref<64x128xf32, #tpu.memory_space<any>>, %arg5: memref<64x128xf32, #tpu.memory_space<any>>, %arg6: memref<64x128xf32, #tpu.memory_space<any>>, %arg7: memref<64x128xf32, #tpu.memory_space<any>>, %arg8: memref<64x128xf32, #tpu.memory_space<any>>, %arg9: memref<64x128xf32, #tpu.memory_space<any>>, %arg10: memref<64x128xf32, #tpu.memory_space<any>>, %arg11: memref<11x64x128xf32, #tpu.memory_space<any>>, %arg12: memref<11x!tpu.dma_semaphore, #tpu.memory_space<semaphore_mem>>) attributes {dimension_semantics = [], scalar_prefetch = 0 : i64, scratch_operands = 1 : i64, tpu.core_type = #tpu.core_type<tc>} {
    %c0_i32 = arith.constant 0 : i32
    %c0_i32_0 = arith.constant 0 : i32
    %c0_i32_1 = arith.constant 0 : i32
    %c0_i32_2 = arith.constant 0 : i32
    %0 = tpu.memref_slice %arg11[%c0_i32, %c0_i32_1, %c0_i32_2] : memref<11x64x128xf32, #tpu.memory_space<any>> -> memref<1x64x128xf32, #tpu.memory_space<any>>
    %1 = tpu.memref_squeeze %0 : memref<1x64x128xf32, #tpu.memory_space<any>> -> memref<64x128xf32, #tpu.memory_space<any>>
    %2 = tpu.memref_slice %arg12[%c0_i32_0] : memref<11x!tpu.dma_semaphore, #tpu.memory_space<semaphore_mem>> -> memref<1x!tpu.dma_semaphore, #tpu.memory_space<semaphore_mem>>
    %3 = tpu.memref_squeeze %2 : memref<1x!tpu.dma_semaphore, #tpu.memory_space<semaphore_mem>> -> memref<!tpu.dma_semaphore, #tpu.memory_space<semaphore_mem>>
    tpu.enqueue_dma source(%arg0 : memref<64x128xf32, #tpu.memory_space<any>>) target(%1 : memref<64x128xf32, #tpu.memory_space<any>>) target_semaphore(%3 : memref<!tpu.dma_semaphore, #tpu.memory_space<semaphore_mem>>)
    %c1_i32 = arith.constant 1 : i32
    %c1_i32_3 = arith.constant 1 : i32
    %c0_i32_4 = arith.constant 0 : i32
    %c0_i32_5 = arith.constant 0 : i32
    %4 = tpu.memref_slice %arg11[%c1_i32, %c0_i32_4, %c0_i32_5] : memref<11x64x128xf32, #tpu.memory_space<any>> -> memref<1x64x128xf32, #tpu.memory_space<any>>
    %5 = tpu.memref_squeeze %4 : memref<1x64x128xf32, #tpu.memory_space<any>> -> memref<64x128xf32, #tpu.memory_space<any>>
    %6 = tpu.memref_slice %arg12[%c1_i32_3] : memref<11x!tpu.dma_semaphore, #tpu.memory_space<semaphore_mem>> -> memref<1x!tpu.dma_semaphore, #tpu.memory_space<semaphore_mem>>
    %7 = tpu.memref_squeeze %6 : memref<1x!tpu.dma_semaphore, #tpu.memory_space<semaphore_mem>> -> memref<!tpu.dma_semaphore, #tpu.memory_space<semaphore_mem>>
    tpu.enqueue_dma source(%arg1 : memref<64x128xf32, #tpu.memory_space<any>>) target(%5 : memref<64x128xf32, #tpu.memory_space<any>>) target_semaphore(%7 : memref<!tpu.dma_semaphore, #tpu.memory_space<semaphore_mem>>)
    %c2_i32 = arith.constant 2 : i32
    %c2_i32_6 = arith.constant 2 : i32
    %c0_i32_7 = arith.constant 0 : i32
    %c0_i32_8 = arith.constant 0 : i32
    %8 = tpu.memref_slice %arg11[%c2_i32, %c0_i32_7, %c0_i32_8] : memref<11x64x128xf32, #tpu.memory_space<any>> -> memref<1x64x128xf32, #tpu.memory_space<any>>
    %9 = tpu.memref_squeeze %8 : memref<1x64x128xf32, #tpu.memory_space<any>> -> memref<64x128xf32, #tpu.memory_space<any>>
    %10 = tpu.memref_slice %arg12[%c2_i32_6] : memref<11x!tpu.dma_semaphore, #tpu.memory_space<semaphore_mem>> -> memref<1x!tpu.dma_semaphore, #tpu.memory_space<semaphore_mem>>
    %11 = tpu.memref_squeeze %10 : memref<1x!tpu.dma_semaphore, #tpu.memory_space<semaphore_mem>> -> memref<!tpu.dma_semaphore, #tpu.memory_space<semaphore_mem>>
    tpu.enqueue_dma source(%arg2 : memref<64x128xf32, #tpu.memory_space<any>>) target(%9 : memref<64x128xf32, #tpu.memory_space<any>>) target_semaphore(%11 : memref<!tpu.dma_semaphore, #tpu.memory_space<semaphore_mem>>)
    %c3_i32 = arith.constant 3 : i32
    %c3_i32_9 = arith.constant 3 : i32
    %c0_i32_10 = arith.constant 0 : i32
    %c0_i32_11 = arith.constant 0 : i32
    %12 = tpu.memref_slice %arg11[%c3_i32, %c0_i32_10, %c0_i32_11] : memref<11x64x128xf32, #tpu.memory_space<any>> -> memref<1x64x128xf32, #tpu.memory_space<any>>
    %13 = tpu.memref_squeeze %12 : memref<1x64x128xf32, #tpu.memory_space<any>> -> memref<64x128xf32, #tpu.memory_space<any>>
    %14 = tpu.memref_slice %arg12[%c3_i32_9] : memref<11x!tpu.dma_semaphore, #tpu.memory_space<semaphore_mem>> -> memref<1x!tpu.dma_semaphore, #tpu.memory_space<semaphore_mem>>
    %15 = tpu.memref_squeeze %14 : memref<1x!tpu.dma_semaphore, #tpu.memory_space<semaphore_mem>> -> memref<!tpu.dma_semaphore, #tpu.memory_space<semaphore_mem>>
    tpu.enqueue_dma source(%arg3 : memref<64x128xf32, #tpu.memory_space<any>>) target(%13 : memref<64x128xf32, #tpu.memory_space<any>>) target_semaphore(%15 : memref<!tpu.dma_semaphore, #tpu.memory_space<semaphore_mem>>)
    %c4_i32 = arith.constant 4 : i32
    %c4_i32_12 = arith.constant 4 : i32
    %c0_i32_13 = arith.constant 0 : i32
    %c0_i32_14 = arith.constant 0 : i32
    %16 = tpu.memref_slice %arg11[%c4_i32, %c0_i32_13, %c0_i32_14] : memref<11x64x128xf32, #tpu.memory_space<any>> -> memref<1x64x128xf32, #tpu.memory_space<any>>
    %17 = tpu.memref_squeeze %16 : memref<1x64x128xf32, #tpu.memory_space<any>> -> memref<64x128xf32, #tpu.memory_space<any>>
    %18 = tpu.memref_slice %arg12[%c4_i32_12] : memref<11x!tpu.dma_semaphore, #tpu.memory_space<semaphore_mem>> -> memref<1x!tpu.dma_semaphore, #tpu.memory_space<semaphore_mem>>
    %19 = tpu.memref_squeeze %18 : memref<1x!tpu.dma_semaphore, #tpu.memory_space<semaphore_mem>> -> memref<!tpu.dma_semaphore, #tpu.memory_space<semaphore_mem>>
    tpu.enqueue_dma source(%arg4 : memref<64x128xf32, #tpu.memory_space<any>>) target(%17 : memref<64x128xf32, #tpu.memory_space<any>>) target_semaphore(%19 : memref<!tpu.dma_semaphore, #tpu.memory_space<semaphore_mem>>)
    %c5_i32 = arith.constant 5 : i32
    %c5_i32_15 = arith.constant 5 : i32
    %c0_i32_16 = arith.constant 0 : i32
    %c0_i32_17 = arith.constant 0 : i32
    %20 = tpu.memref_slice %arg11[%c5_i32, %c0_i32_16, %c0_i32_17] : memref<11x64x128xf32, #tpu.memory_space<any>> -> memref<1x64x128xf32, #tpu.memory_space<any>>
    %21 = tpu.memref_squeeze %20 : memref<1x64x128xf32, #tpu.memory_space<any>> -> memref<64x128xf32, #tpu.memory_space<any>>
    %22 = tpu.memref_slice %arg12[%c5_i32_15] : memref<11x!tpu.dma_semaphore, #tpu.memory_space<semaphore_mem>> -> memref<1x!tpu.dma_semaphore, #tpu.memory_space<semaphore_mem>>
    %23 = tpu.memref_squeeze %22 : memref<1x!tpu.dma_semaphore, #tpu.memory_space<semaphore_mem>> -> memref<!tpu.dma_semaphore, #tpu.memory_space<semaphore_mem>>
    tpu.enqueue_dma source(%arg5 : memref<64x128xf32, #tpu.memory_space<any>>) target(%21 : memref<64x128xf32, #tpu.memory_space<any>>) target_semaphore(%23 : memref<!tpu.dma_semaphore, #tpu.memory_space<semaphore_mem>>)
    %c6_i32 = arith.constant 6 : i32
    %c6_i32_18 = arith.constant 6 : i32
    %c0_i32_19 = arith.constant 0 : i32
    %c0_i32_20 = arith.constant 0 : i32
    %24 = tpu.memref_slice %arg11[%c6_i32, %c0_i32_19, %c0_i32_20] : memref<11x64x128xf32, #tpu.memory_space<any>> -> memref<1x64x128xf32, #tpu.memory_space<any>>
    %25 = tpu.memref_squeeze %24 : memref<1x64x128xf32, #tpu.memory_space<any>> -> memref<64x128xf32, #tpu.memory_space<any>>
    %26 = tpu.memref_slice %arg12[%c6_i32_18] : memref<11x!tpu.dma_semaphore, #tpu.memory_space<semaphore_mem>> -> memref<1x!tpu.dma_semaphore, #tpu.memory_space<semaphore_mem>>
    %27 = tpu.memref_squeeze %26 : memref<1x!tpu.dma_semaphore, #tpu.memory_space<semaphore_mem>> -> memref<!tpu.dma_semaphore, #tpu.memory_space<semaphore_mem>>
    tpu.enqueue_dma source(%arg6 : memref<64x128xf32, #tpu.memory_space<any>>) target(%25 : memref<64x128xf32, #tpu.memory_space<any>>) target_semaphore(%27 : memref<!tpu.dma_semaphore, #tpu.memory_space<semaphore_mem>>)
    %c7_i32 = arith.constant 7 : i32
    %c7_i32_21 = arith.constant 7 : i32
    %c0_i32_22 = arith.constant 0 : i32
    %c0_i32_23 = arith.constant 0 : i32
    %28 = tpu.memref_slice %arg11[%c7_i32, %c0_i32_22, %c0_i32_23] : memref<11x64x128xf32, #tpu.memory_space<any>> -> memref<1x64x128xf32, #tpu.memory_space<any>>
    %29 = tpu.memref_squeeze %28 : memref<1x64x128xf32, #tpu.memory_space<any>> -> memref<64x128xf32, #tpu.memory_space<any>>
    %30 = tpu.memref_slice %arg12[%c7_i32_21] : memref<11x!tpu.dma_semaphore, #tpu.memory_space<semaphore_mem>> -> memref<1x!tpu.dma_semaphore, #tpu.memory_space<semaphore_mem>>
    %31 = tpu.memref_squeeze %30 : memref<1x!tpu.dma_semaphore, #tpu.memory_space<semaphore_mem>> -> memref<!tpu.dma_semaphore, #tpu.memory_space<semaphore_mem>>
    tpu.enqueue_dma source(%arg7 : memref<64x128xf32, #tpu.memory_space<any>>) target(%29 : memref<64x128xf32, #tpu.memory_space<any>>) target_semaphore(%31 : memref<!tpu.dma_semaphore, #tpu.memory_space<semaphore_mem>>)
    %c8_i32 = arith.constant 8 : i32
    %c8_i32_24 = arith.constant 8 : i32
    %c0_i32_25 = arith.constant 0 : i32
    %c0_i32_26 = arith.constant 0 : i32
    %32 = tpu.memref_slice %arg11[%c8_i32, %c0_i32_25, %c0_i32_26] : memref<11x64x128xf32, #tpu.memory_space<any>> -> memref<1x64x128xf32, #tpu.memory_space<any>>
    %33 = tpu.memref_squeeze %32 : memref<1x64x128xf32, #tpu.memory_space<any>> -> memref<64x128xf32, #tpu.memory_space<any>>
    %34 = tpu.memref_slice %arg12[%c8_i32_24] : memref<11x!tpu.dma_semaphore, #tpu.memory_space<semaphore_mem>> -> memref<1x!tpu.dma_semaphore, #tpu.memory_space<semaphore_mem>>
    %35 = tpu.memref_squeeze %34 : memref<1x!tpu.dma_semaphore, #tpu.memory_space<semaphore_mem>> -> memref<!tpu.dma_semaphore, #tpu.memory_space<semaphore_mem>>
    tpu.enqueue_dma source(%arg8 : memref<64x128xf32, #tpu.memory_space<any>>) target(%33 : memref<64x128xf32, #tpu.memory_space<any>>) target_semaphore(%35 : memref<!tpu.dma_semaphore, #tpu.memory_space<semaphore_mem>>)
    %c9_i32 = arith.constant 9 : i32
    %c9_i32_27 = arith.constant 9 : i32
    %c0_i32_28 = arith.constant 0 : i32
    %c0_i32_29 = arith.constant 0 : i32
    %36 = tpu.memref_slice %arg11[%c9_i32, %c0_i32_28, %c0_i32_29] : memref<11x64x128xf32, #tpu.memory_space<any>> -> memref<1x64x128xf32, #tpu.memory_space<any>>
    %37 = tpu.memref_squeeze %36 : memref<1x64x128xf32, #tpu.memory_space<any>> -> memref<64x128xf32, #tpu.memory_space<any>>
    %38 = tpu.memref_slice %arg12[%c9_i32_27] : memref<11x!tpu.dma_semaphore, #tpu.memory_space<semaphore_mem>> -> memref<1x!tpu.dma_semaphore, #tpu.memory_space<semaphore_mem>>
    %39 = tpu.memref_squeeze %38 : memref<1x!tpu.dma_semaphore, #tpu.memory_space<semaphore_mem>> -> memref<!tpu.dma_semaphore, #tpu.memory_space<semaphore_mem>>
    tpu.enqueue_dma source(%arg9 : memref<64x128xf32, #tpu.memory_space<any>>) target(%37 : memref<64x128xf32, #tpu.memory_space<any>>) target_semaphore(%39 : memref<!tpu.dma_semaphore, #tpu.memory_space<semaphore_mem>>)
    %c10_i32 = arith.constant 10 : i32
    %c10_i32_30 = arith.constant 10 : i32
    %c0_i32_31 = arith.constant 0 : i32
    %c0_i32_32 = arith.constant 0 : i32
    %40 = tpu.memref_slice %arg11[%c10_i32, %c0_i32_31, %c0_i32_32] : memref<11x64x128xf32, #tpu.memory_space<any>> -> memref<1x64x128xf32, #tpu.memory_space<any>>
    %41 = tpu.memref_squeeze %40 : memref<1x64x128xf32, #tpu.memory_space<any>> -> memref<64x128xf32, #tpu.memory_space<any>>
    %42 = tpu.memref_slice %arg12[%c10_i32_30] : memref<11x!tpu.dma_semaphore, #tpu.memory_space<semaphore_mem>> -> memref<1x!tpu.dma_semaphore, #tpu.memory_space<semaphore_mem>>
    %43 = tpu.memref_squeeze %42 : memref<1x!tpu.dma_semaphore, #tpu.memory_space<semaphore_mem>> -> memref<!tpu.dma_semaphore, #tpu.memory_space<semaphore_mem>>
    tpu.enqueue_dma source(%arg10 : memref<64x128xf32, #tpu.memory_space<any>>) target(%41 : memref<64x128xf32, #tpu.memory_space<any>>) target_semaphore(%43 : memref<!tpu.dma_semaphore, #tpu.memory_space<semaphore_mem>>)
    %c0_i32_33 = arith.constant 0 : i32
    %c0_i32_34 = arith.constant 0 : i32
    %c0_i32_35 = arith.constant 0 : i32
    %c0_i32_36 = arith.constant 0 : i32
    %44 = tpu.memref_slice %arg11[%c0_i32_33, %c0_i32_35, %c0_i32_36] : memref<11x64x128xf32, #tpu.memory_space<any>> -> memref<1x64x128xf32, #tpu.memory_space<any>>
    %45 = tpu.memref_squeeze %44 : memref<1x64x128xf32, #tpu.memory_space<any>> -> memref<64x128xf32, #tpu.memory_space<any>>
    %46 = tpu.memref_slice %arg12[%c0_i32_34] : memref<11x!tpu.dma_semaphore, #tpu.memory_space<semaphore_mem>> -> memref<1x!tpu.dma_semaphore, #tpu.memory_space<semaphore_mem>>
    %47 = tpu.memref_squeeze %46 : memref<1x!tpu.dma_semaphore, #tpu.memory_space<semaphore_mem>> -> memref<!tpu.dma_semaphore, #tpu.memory_space<semaphore_mem>>
    tpu.wait_dma2 semaphore(%47 : memref<!tpu.dma_semaphore, #tpu.memory_space<semaphore_mem>>) src(%arg0 : memref<64x128xf32, #tpu.memory_space<any>>) dst(%45 : memref<64x128xf32, #tpu.memory_space<any>>)
    %c1_i32_37 = arith.constant 1 : i32
    %c1_i32_38 = arith.constant 1 : i32
    %c0_i32_39 = arith.constant 0 : i32
    %c0_i32_40 = arith.constant 0 : i32
    %48 = tpu.memref_slice %arg11[%c1_i32_37, %c0_i32_39, %c0_i32_40] : memref<11x64x128xf32, #tpu.memory_space<any>> -> memref<1x64x128xf32, #tpu.memory_space<any>>
    %49 = tpu.memref_squeeze %48 : memref<1x64x128xf32, #tpu.memory_space<any>> -> memref<64x128xf32, #tpu.memory_space<any>>
    %50 = tpu.memref_slice %arg12[%c1_i32_38] : memref<11x!tpu.dma_semaphore, #tpu.memory_space<semaphore_mem>> -> memref<1x!tpu.dma_semaphore, #tpu.memory_space<semaphore_mem>>
    %51 = tpu.memref_squeeze %50 : memref<1x!tpu.dma_semaphore, #tpu.memory_space<semaphore_mem>> -> memref<!tpu.dma_semaphore, #tpu.memory_space<semaphore_mem>>
    tpu.wait_dma2 semaphore(%51 : memref<!tpu.dma_semaphore, #tpu.memory_space<semaphore_mem>>) src(%arg1 : memref<64x128xf32, #tpu.memory_space<any>>) dst(%49 : memref<64x128xf32, #tpu.memory_space<any>>)
    %c2_i32_41 = arith.constant 2 : i32
    %c2_i32_42 = arith.constant 2 : i32
    %c0_i32_43 = arith.constant 0 : i32
    %c0_i32_44 = arith.constant 0 : i32
    %52 = tpu.memref_slice %arg11[%c2_i32_41, %c0_i32_43, %c0_i32_44] : memref<11x64x128xf32, #tpu.memory_space<any>> -> memref<1x64x128xf32, #tpu.memory_space<any>>
    %53 = tpu.memref_squeeze %52 : memref<1x64x128xf32, #tpu.memory_space<any>> -> memref<64x128xf32, #tpu.memory_space<any>>
    %54 = tpu.memref_slice %arg12[%c2_i32_42] : memref<11x!tpu.dma_semaphore, #tpu.memory_space<semaphore_mem>> -> memref<1x!tpu.dma_semaphore, #tpu.memory_space<semaphore_mem>>
    %55 = tpu.memref_squeeze %54 : memref<1x!tpu.dma_semaphore, #tpu.memory_space<semaphore_mem>> -> memref<!tpu.dma_semaphore, #tpu.memory_space<semaphore_mem>>
    tpu.wait_dma2 semaphore(%55 : memref<!tpu.dma_semaphore, #tpu.memory_space<semaphore_mem>>) src(%arg2 : memref<64x128xf32, #tpu.memory_space<any>>) dst(%53 : memref<64x128xf32, #tpu.memory_space<any>>)
    %c3_i32_45 = arith.constant 3 : i32
    %c3_i32_46 = arith.constant 3 : i32
    %c0_i32_47 = arith.constant 0 : i32
    %c0_i32_48 = arith.constant 0 : i32
    %56 = tpu.memref_slice %arg11[%c3_i32_45, %c0_i32_47, %c0_i32_48] : memref<11x64x128xf32, #tpu.memory_space<any>> -> memref<1x64x128xf32, #tpu.memory_space<any>>
    %57 = tpu.memref_squeeze %56 : memref<1x64x128xf32, #tpu.memory_space<any>> -> memref<64x128xf32, #tpu.memory_space<any>>
    %58 = tpu.memref_slice %arg12[%c3_i32_46] : memref<11x!tpu.dma_semaphore, #tpu.memory_space<semaphore_mem>> -> memref<1x!tpu.dma_semaphore, #tpu.memory_space<semaphore_mem>>
    %59 = tpu.memref_squeeze %58 : memref<1x!tpu.dma_semaphore, #tpu.memory_space<semaphore_mem>> -> memref<!tpu.dma_semaphore, #tpu.memory_space<semaphore_mem>>
    tpu.wait_dma2 semaphore(%59 : memref<!tpu.dma_semaphore, #tpu.memory_space<semaphore_mem>>) src(%arg3 : memref<64x128xf32, #tpu.memory_space<any>>) dst(%57 : memref<64x128xf32, #tpu.memory_space<any>>)
    %c4_i32_49 = arith.constant 4 : i32
    %c4_i32_50 = arith.constant 4 : i32
    %c0_i32_51 = arith.constant 0 : i32
    %c0_i32_52 = arith.constant 0 : i32
    %60 = tpu.memref_slice %arg11[%c4_i32_49, %c0_i32_51, %c0_i32_52] : memref<11x64x128xf32, #tpu.memory_space<any>> -> memref<1x64x128xf32, #tpu.memory_space<any>>
    %61 = tpu.memref_squeeze %60 : memref<1x64x128xf32, #tpu.memory_space<any>> -> memref<64x128xf32, #tpu.memory_space<any>>
    %62 = tpu.memref_slice %arg12[%c4_i32_50] : memref<11x!tpu.dma_semaphore, #tpu.memory_space<semaphore_mem>> -> memref<1x!tpu.dma_semaphore, #tpu.memory_space<semaphore_mem>>
    %63 = tpu.memref_squeeze %62 : memref<1x!tpu.dma_semaphore, #tpu.memory_space<semaphore_mem>> -> memref<!tpu.dma_semaphore, #tpu.memory_space<semaphore_mem>>
    tpu.wait_dma2 semaphore(%63 : memref<!tpu.dma_semaphore, #tpu.memory_space<semaphore_mem>>) src(%arg4 : memref<64x128xf32, #tpu.memory_space<any>>) dst(%61 : memref<64x128xf32, #tpu.memory_space<any>>)
    %c5_i32_53 = arith.constant 5 : i32
    %c5_i32_54 = arith.constant 5 : i32
    %c0_i32_55 = arith.constant 0 : i32
    %c0_i32_56 = arith.constant 0 : i32
    %64 = tpu.memref_slice %arg11[%c5_i32_53, %c0_i32_55, %c0_i32_56] : memref<11x64x128xf32, #tpu.memory_space<any>> -> memref<1x64x128xf32, #tpu.memory_space<any>>
    %65 = tpu.memref_squeeze %64 : memref<1x64x128xf32, #tpu.memory_space<any>> -> memref<64x128xf32, #tpu.memory_space<any>>
    %66 = tpu.memref_slice %arg12[%c5_i32_54] : memref<11x!tpu.dma_semaphore, #tpu.memory_space<semaphore_mem>> -> memref<1x!tpu.dma_semaphore, #tpu.memory_space<semaphore_mem>>
    %67 = tpu.memref_squeeze %66 : memref<1x!tpu.dma_semaphore, #tpu.memory_space<semaphore_mem>> -> memref<!tpu.dma_semaphore, #tpu.memory_space<semaphore_mem>>
    tpu.wait_dma2 semaphore(%67 : memref<!tpu.dma_semaphore, #tpu.memory_space<semaphore_mem>>) src(%arg5 : memref<64x128xf32, #tpu.memory_space<any>>) dst(%65 : memref<64x128xf32, #tpu.memory_space<any>>)
    %c6_i32_57 = arith.constant 6 : i32
    %c6_i32_58 = arith.constant 6 : i32
    %c0_i32_59 = arith.constant 0 : i32
    %c0_i32_60 = arith.constant 0 : i32
    %68 = tpu.memref_slice %arg11[%c6_i32_57, %c0_i32_59, %c0_i32_60] : memref<11x64x128xf32, #tpu.memory_space<any>> -> memref<1x64x128xf32, #tpu.memory_space<any>>
    %69 = tpu.memref_squeeze %68 : memref<1x64x128xf32, #tpu.memory_space<any>> -> memref<64x128xf32, #tpu.memory_space<any>>
    %70 = tpu.memref_slice %arg12[%c6_i32_58] : memref<11x!tpu.dma_semaphore, #tpu.memory_space<semaphore_mem>> -> memref<1x!tpu.dma_semaphore, #tpu.memory_space<semaphore_mem>>
    %71 = tpu.memref_squeeze %70 : memref<1x!tpu.dma_semaphore, #tpu.memory_space<semaphore_mem>> -> memref<!tpu.dma_semaphore, #tpu.memory_space<semaphore_mem>>
    tpu.wait_dma2 semaphore(%71 : memref<!tpu.dma_semaphore, #tpu.memory_space<semaphore_mem>>) src(%arg6 : memref<64x128xf32, #tpu.memory_space<any>>) dst(%69 : memref<64x128xf32, #tpu.memory_space<any>>)
    %c7_i32_61 = arith.constant 7 : i32
    %c7_i32_62 = arith.constant 7 : i32
    %c0_i32_63 = arith.constant 0 : i32
    %c0_i32_64 = arith.constant 0 : i32
    %72 = tpu.memref_slice %arg11[%c7_i32_61, %c0_i32_63, %c0_i32_64] : memref<11x64x128xf32, #tpu.memory_space<any>> -> memref<1x64x128xf32, #tpu.memory_space<any>>
    %73 = tpu.memref_squeeze %72 : memref<1x64x128xf32, #tpu.memory_space<any>> -> memref<64x128xf32, #tpu.memory_space<any>>
    %74 = tpu.memref_slice %arg12[%c7_i32_62] : memref<11x!tpu.dma_semaphore, #tpu.memory_space<semaphore_mem>> -> memref<1x!tpu.dma_semaphore, #tpu.memory_space<semaphore_mem>>
    %75 = tpu.memref_squeeze %74 : memref<1x!tpu.dma_semaphore, #tpu.memory_space<semaphore_mem>> -> memref<!tpu.dma_semaphore, #tpu.memory_space<semaphore_mem>>
    tpu.wait_dma2 semaphore(%75 : memref<!tpu.dma_semaphore, #tpu.memory_space<semaphore_mem>>) src(%arg7 : memref<64x128xf32, #tpu.memory_space<any>>) dst(%73 : memref<64x128xf32, #tpu.memory_space<any>>)
    %c8_i32_65 = arith.constant 8 : i32
    %c8_i32_66 = arith.constant 8 : i32
    %c0_i32_67 = arith.constant 0 : i32
    %c0_i32_68 = arith.constant 0 : i32
    %76 = tpu.memref_slice %arg11[%c8_i32_65, %c0_i32_67, %c0_i32_68] : memref<11x64x128xf32, #tpu.memory_space<any>> -> memref<1x64x128xf32, #tpu.memory_space<any>>
    %77 = tpu.memref_squeeze %76 : memref<1x64x128xf32, #tpu.memory_space<any>> -> memref<64x128xf32, #tpu.memory_space<any>>
    %78 = tpu.memref_slice %arg12[%c8_i32_66] : memref<11x!tpu.dma_semaphore, #tpu.memory_space<semaphore_mem>> -> memref<1x!tpu.dma_semaphore, #tpu.memory_space<semaphore_mem>>
    %79 = tpu.memref_squeeze %78 : memref<1x!tpu.dma_semaphore, #tpu.memory_space<semaphore_mem>> -> memref<!tpu.dma_semaphore, #tpu.memory_space<semaphore_mem>>
    tpu.wait_dma2 semaphore(%79 : memref<!tpu.dma_semaphore, #tpu.memory_space<semaphore_mem>>) src(%arg8 : memref<64x128xf32, #tpu.memory_space<any>>) dst(%77 : memref<64x128xf32, #tpu.memory_space<any>>)
    %c9_i32_69 = arith.constant 9 : i32
    %c9_i32_70 = arith.constant 9 : i32
    %c0_i32_71 = arith.constant 0 : i32
    %c0_i32_72 = arith.constant 0 : i32
    %80 = tpu.memref_slice %arg11[%c9_i32_69, %c0_i32_71, %c0_i32_72] : memref<11x64x128xf32, #tpu.memory_space<any>> -> memref<1x64x128xf32, #tpu.memory_space<any>>
    %81 = tpu.memref_squeeze %80 : memref<1x64x128xf32, #tpu.memory_space<any>> -> memref<64x128xf32, #tpu.memory_space<any>>
    %82 = tpu.memref_slice %arg12[%c9_i32_70] : memref<11x!tpu.dma_semaphore, #tpu.memory_space<semaphore_mem>> -> memref<1x!tpu.dma_semaphore, #tpu.memory_space<semaphore_mem>>
    %83 = tpu.memref_squeeze %82 : memref<1x!tpu.dma_semaphore, #tpu.memory_space<semaphore_mem>> -> memref<!tpu.dma_semaphore, #tpu.memory_space<semaphore_mem>>
    tpu.wait_dma2 semaphore(%83 : memref<!tpu.dma_semaphore, #tpu.memory_space<semaphore_mem>>) src(%arg9 : memref<64x128xf32, #tpu.memory_space<any>>) dst(%81 : memref<64x128xf32, #tpu.memory_space<any>>)
    %c10_i32_73 = arith.constant 10 : i32
    %c10_i32_74 = arith.constant 10 : i32
    %c0_i32_75 = arith.constant 0 : i32
    %c0_i32_76 = arith.constant 0 : i32
    %84 = tpu.memref_slice %arg11[%c10_i32_73, %c0_i32_75, %c0_i32_76] : memref<11x64x128xf32, #tpu.memory_space<any>> -> memref<1x64x128xf32, #tpu.memory_space<any>>
    %85 = tpu.memref_squeeze %84 : memref<1x64x128xf32, #tpu.memory_space<any>> -> memref<64x128xf32, #tpu.memory_space<any>>
    %86 = tpu.memref_slice %arg12[%c10_i32_74] : memref<11x!tpu.dma_semaphore, #tpu.memory_space<semaphore_mem>> -> memref<1x!tpu.dma_semaphore, #tpu.memory_space<semaphore_mem>>
    %87 = tpu.memref_squeeze %86 : memref<1x!tpu.dma_semaphore, #tpu.memory_space<semaphore_mem>> -> memref<!tpu.dma_semaphore, #tpu.memory_space<semaphore_mem>>
    tpu.wait_dma2 semaphore(%87 : memref<!tpu.dma_semaphore, #tpu.memory_space<semaphore_mem>>) src(%arg10 : memref<64x128xf32, #tpu.memory_space<any>>) dst(%85 : memref<64x128xf32, #tpu.memory_space<any>>)
    return
  }
}

</mosaic_0001>

<bundles_post_ra>
// kernel: tpu_custom_call.1
= control target key start
LH: loop header
LB: loop body
LE: loop exit
PB: predicated region body
PF: predicated region fallthrough
CT: control target
= control target key end

     0   :  { %s334_s20 = smov [#allocation2]   ;;  %s335_s21 = smov [#allocation3]   ;;  %s494_s0 = inlined_call_operand.hbm [shape: f32[64,128], index: 0, kind: input, shape index: {}]   ;;  %s495_s11 = inlined_call_operand.hbm [shape: f32[11,64,128], index: 11, kind: output, shape index: {}]   ;;  %s496_s1 = inlined_call_operand.hbm [shape: f32[64,128], index: 1, kind: input, shape index: {}]   ;;  %s497_s2 = inlined_call_operand.hbm [shape: f32[64,128], index: 2, kind: input, shape index: {}]   ;;  %s498_s3 = inlined_call_operand.hbm [shape: f32[64,128], index: 3, kind: input, shape index: {}]   ;;  %s499_s4 = inlined_call_operand.hbm [shape: f32[64,128], index: 4, kind: input, shape index: {}]   ;;  %s500_s5 = inlined_call_operand.hbm [shape: f32[64,128], index: 5, kind: input, shape index: {}]   ;;  %s501_s6 = inlined_call_operand.hbm [shape: f32[64,128], index: 6, kind: input, shape index: {}]   ;;  %s502_s7 = inlined_call_operand.hbm [shape: f32[64,128], index: 7, kind: input, shape index: {}]   ;;  %s503_s8 = inlined_call_operand.hbm [shape: f32[64,128], index: 8, kind: input, shape index: {}]   ;;  %s504_s9 = inlined_call_operand.hbm [shape: f32[64,128], index: 9, kind: input, shape index: {}]   ;;  %s505_s10 = inlined_call_operand.hbm [shape: f32[64,128], index: 10, kind: input, shape index: {}]  }
   0x1   :  { %s29_s19 = scalar_lea.hbm %s495_s11, 1024  ;;  %s336_s22 = smov 0  }
   0x2   :  { %28 = dma.general %s494_s0, 1024, %s495_s11, %s334_s20, %s335_s21, [#allocation4], %s336_s22, 0  }
   0x3   :  { %s337_s27 = smov [#allocation2 + $0x1]   ;;  %s338_s28 = smov [#allocation5]  }
   0x4   :  { %43 = dma.general %s496_s1, 1024, %s29_s19, %s337_s27, %s338_s28, [#allocation6], %s336_s22, 0  }
   0x5   :  { %s44_s14 = scalar_lea.hbm %s495_s11, 2048  ;;  %s59_s17 = scalar_lea.hbm %s495_s11, 3072 }
   0x6   :  { %s339_s18 = smov [#allocation2 + $0x2]   ;;  %s340_s23 = smov [#allocation7]  }
   0x7   :  { %58 = dma.general %s497_s2, 1024, %s44_s14, %s339_s18, %s340_s23, [#allocation8], %s336_s22, 0  }
   0x8   :  { %s341_s20 = smov [#allocation2 + $0x3]   ;;  %s342_s21 = smov [#allocation9]  }
   0x9   :  { %73 = dma.general %s498_s3, 1024, %s59_s17, %s341_s20, %s342_s21, [#allocation10], %s336_s22, 0  }
   0xa   :  { %s74_s27 = scalar_lea.hbm %s495_s11, 4096  ;;  %s89_s30 = scalar_lea.hbm %s495_s11, 5120 }
   0xb   :  { %s343_s12 = smov [#allocation2 + $0x4]   ;;  %s344_s13 = smov [#allocation11]  }
   0xc   :  { %88 = dma.general %s499_s4, 1024, %s74_s27, %s343_s12, %s344_s13, [#allocation12], %s336_s22, 0  }
   0xd   :  { %s345_s14 = smov [#allocation2 + $0x5]   ;;  %s346_s16 = smov [#allocation13]  }
   0xe   :  { %103 = dma.general %s500_s5, 1024, %s89_s30, %s345_s14, %s346_s16, [#allocation14], %s336_s22, 0  }
   0xf   :  { %s104_s24 = scalar_lea.hbm %s495_s11, 6144  ;;  %s119_s21 = scalar_lea.hbm %s495_s11, 7168 }
  0x10   :  { %s347_s25 = smov [#allocation2 + $0x6]   ;;  %s348_s1 = smov [#allocation15]  }
  0x11   :  { %118 = dma.general %s501_s6, 1024, %s104_s24, %s347_s25, %s348_s1, [#allocation16], %s336_s22, 0  }
  0x12   :  { %s349_s26 = smov [#allocation2 + $0x7]   ;;  %s350_s27 = smov [#allocation17]  }
  0x13   :  { %133 = dma.general %s502_s7, 1024, %s119_s21, %s349_s26, %s350_s27, [#allocation18], %s336_s22, 0  }
  0x14   :  { %s134_s12 = scalar_lea.hbm %s495_s11, 8192  ;;  %s149_s2 = scalar_lea.hbm %s495_s11, 9216 }
  0x15   :  { %s351_s14 = smov [#allocation2 + $0x8]   ;;  %s352_s16 = smov [#allocation19]  }
  0x16   :  { %148 = dma.general %s503_s8, 1024, %s134_s12, %s351_s14, %s352_s16, [#allocation20], %s336_s22, 0  }
  0x17   :  { %s353_s3 = smov [#allocation2 + $0x9]   ;;  %s354_s17 = smov [#allocation21]  }
  0x18   :  { %163 = dma.general %s504_s9, 1024, %s149_s2, %s353_s3, %s354_s17, [#allocation22], %s336_s22, 0  }
  0x19   :  { %s164_s20 = scalar_lea.hbm %s495_s11, 10240  ;;  %s355_s21 = smov [#allocation2 + $0xa]  }
  0x1a   :  { %s356_s25 = smov [#allocation23]  }
  0x1b   :  { %178 = dma.general %s505_s10, 1024, %s164_s20, %s355_s21, %s356_s25, [#allocation24], %s336_s22, 0  }
  0x1c   :  { %312 = dma.done.wait [#allocation2], 1024 }
  0x1d   :  { %313 = vsyncadd [#allocation2], 4294966272 }
  0x1e   :  { %314 = dma.done.wait [#allocation2 + $0x1], 1024 }
  0x1f   :  { %315 = vsyncadd [#allocation2 + $0x1], 4294966272 }
  0x20   :  { %316 = dma.done.wait [#allocation2 + $0x2], 1024 }
  0x21   :  { %317 = vsyncadd [#allocation2 + $0x2], 4294966272 }
  0x22   :  { %318 = dma.done.wait [#allocation2 + $0x3], 1024 }
  0x23   :  { %319 = vsyncadd [#allocation2 + $0x3], 4294966272 }
  0x24   :  { %320 = dma.done.wait [#allocation2 + $0x4], 1024 }
  0x25   :  { %321 = vsyncadd [#allocation2 + $0x4], 4294966272 }
  0x26   :  { %322 = dma.done.wait [#allocation2 + $0x5], 1024 }
  0x27   :  { %323 = vsyncadd [#allocation2 + $0x5], 4294966272 }
  0x28   :  { %324 = dma.done.wait [#allocation2 + $0x6], 1024 }
  0x29   :  { %325 = vsyncadd [#allocation2 + $0x6], 4294966272 }
  0x2a   :  { %326 = dma.done.wait [#allocation2 + $0x7], 1024 }
  0x2b   :  { %327 = vsyncadd [#allocation2 + $0x7], 4294966272 }
  0x2c   :  { %328 = dma.done.wait [#allocation2 + $0x8], 1024 }
  0x2d   :  { %329 = vsyncadd [#allocation2 + $0x8], 4294966272 }
  0x2e   :  { %330 = dma.done.wait [#allocation2 + $0x9], 1024 }
  0x2f   :  { %331 = vsyncadd [#allocation2 + $0x9], 4294966272 }
  0x30   :  { %332 = dma.done.wait [#allocation2 + $0xa], 1024 }
  0x31   :  { %333 = vsyncadd [#allocation2 + $0xa], 4294966272 }
  0x32   :  { %202 = vsyncmov [#allocation2] }
  0x35   :  { %s203_s8 = vpop.sfrf %202 }
  0x36   :  { %p278_p0 = scmp.ne.s32.totalorder %s203_s8, 0 }
  0x38   :  { %207 = shalt.err (%p278_p0)  }
  0x39   :  { %209 = vsyncmov [#allocation2 + $0x1] }
  0x3c   :  { %s210_s9 = vpop.sfrf %209 }
  0x3d   :  { %p279_p1 = scmp.ne.s32.totalorder %s210_s9, 0 }
  0x3f   :  { %214 = shalt.err (%p279_p1)  }
  0x40   :  { %216 = vsyncmov [#allocation2 + $0x2] }
  0x43   :  { %s217_s10 = vpop.sfrf %216 }
  0x44   :  { %p280_p2 = scmp.ne.s32.totalorder %s217_s10, 0 }
  0x46   :  { %221 = shalt.err (%p280_p2)  }
  0x47   :  { %223 = vsyncmov [#allocation2 + $0x3] }
  0x4a   :  { %s224_s11 = vpop.sfrf %223 }
  0x4b   :  { %p281_p3 = scmp.ne.s32.totalorder %s224_s11, 0 }
  0x4d   :  { %228 = shalt.err (%p281_p3)  }
  0x4e   :  { %230 = vsyncmov [#allocation2 + $0x4] }
  0x51   :  { %s231_s22 = vpop.sfrf %230 }
  0x52   :  { %p282_p4 = scmp.ne.s32.totalorder %s231_s22, 0 }
  0x54   :  { %235 = shalt.err (%p282_p4)  }
  0x55   :  { %237 = vsyncmov [#allocation2 + $0x5] }
  0x58   :  { %s238_s4 = vpop.sfrf %237 }
  0x59   :  { %p283_p5 = scmp.ne.s32.totalorder %s238_s4, 0 }
  0x5b   :  { %242 = shalt.err (%p283_p5)  }
  0x5c   :  { %244 = vsyncmov [#allocation2 + $0x6] }
  0x5f   :  { %s245_s26 = vpop.sfrf %244 }
  0x60   :  { %p284_p6 = scmp.ne.s32.totalorder %s245_s26, 0 }
  0x62   :  { %249 = shalt.err (%p284_p6)  }
  0x63   :  { %251 = vsyncmov [#allocation2 + $0x7] }
  0x66   :  { %s252_s27 = vpop.sfrf %251 }
  0x67   :  { %p285_p7 = scmp.ne.s32.totalorder %s252_s27, 0 }
  0x69   :  { %256 = shalt.err (%p285_p7)  }
  0x6a   :  { %258 = vsyncmov [#allocation2 + $0x8] }
  0x6d   :  { %s259_s28 = vpop.sfrf %258 }
  0x6e   :  { %p286_p8 = scmp.ne.s32.totalorder %s259_s28, 0 }
  0x70   :  { %263 = shalt.err (%p286_p8)  }
  0x71   :  { %265 = vsyncmov [#allocation2 + $0x9] }
  0x74   :  { %s266_s5 = vpop.sfrf %265 }
  0x75   :  { %p287_p9 = scmp.ne.s32.totalorder %s266_s5, 0 }
  0x77   :  { %270 = shalt.err (%p287_p9)  }
  0x78   :  { %272 = vsyncmov [#allocation2 + $0xa] }
  0x7b   :  { %s273_s29 = vpop.sfrf %272 }
  0x7c   :  { %p288_p10 = scmp.ne.s32.totalorder %s273_s29, 0 }
  0x7e   :  { %277 = shalt.err (%p288_p10)  }

</bundles_post_ra>
